<compile_context>
chip_gen: v7x
topology: tpu7x:2x2x1
jax: 0.10.0
libtpu: 0.0.40
codegen_flags: <defaults>
</compile_context>

<pallas_src>
import math

import jax
import jax.numpy as jnp
from jax.experimental import pallas as pl
from jax.experimental.pallas import tpu as pltpu

_VMEM_LIMIT = 40 << 20         # explicit scoped-VMEM limit (safe on v5e/v6e/v7x)
_RESIDENT_BUDGET = 24 << 20    # conservative VMEM estimate budget for fast path


def _round_up(x, m):
    return ((x + m - 1) // m) * m


# -----------------------------------------------------------------------------
# Kernels
# -----------------------------------------------------------------------------
def _resident_kernel(x_ref, w_ref, s_ref, o_ref):
    """Whole weight resident in VMEM; one (TM, out_dim) output slab per step."""
    acc = jnp.dot(x_ref[...], w_ref[...], preferred_element_type=jnp.float32)
    o_ref[...] = (acc * s_ref[...]).astype(o_ref.dtype)


def _tiled_kernel(x_ref, w_ref, s_ref, o_ref, acc_ref):
    """(TM, TN) output tile; program_id(2) walks the K reduction axis."""
    k = pl.program_id(2)

    @pl.when(k == 0)
    def _():
        acc_ref[...] = jnp.zeros_like(acc_ref)

    acc_ref[...] += jnp.dot(x_ref[...], w_ref[...],
                            preferred_element_type=jnp.float32)

    @pl.when(k == pl.num_programs(2) - 1)
    def _():
        # Per-output-column scale (1, TN) broadcasts over (TM, TN).
        o_ref[...] = (acc_ref[...] * s_ref[...]).astype(o_ref.dtype)


# -----------------------------------------------------------------------------
# Wrapper
# -----------------------------------------------------------------------------
def norm_linear(x, weight, *, use_bf16=False, tm=512, tn=None, tk=None,
                resident_vmem_budget=_RESIDENT_BUDGET):
    """x: (..., in_dim), weight: (in_dim, out_dim)."""
    in_dim, out_dim = weight.shape
    assert x.shape[-1] == in_dim
    lead_shape = x.shape[:-1]
    m = int(math.prod(lead_shape)) if lead_shape else 1
    out_dtype = x.dtype
    out_elt = jnp.dtype(out_dtype).itemsize

    x2d = x.reshape(m, in_dim)

    # Hoisted column-norm reciprocal (F.normalize eps semantics: clamp the
    # norm at 1e-12, then divide).  Computed once in f32 over the full in_dim.
    w_f32 = weight.astype(jnp.float32)
    col_norm = jnp.sqrt(jnp.sum(w_f32 * w_f32, axis=0, keepdims=True))
    inv_norm = 1.0 / jnp.maximum(col_norm, 1e-12)               # (1, out_dim) f32

    if use_bf16:
        # bf16 MXU operands; accumulation and the column scale stay f32.
        x2d = x2d.astype(jnp.bfloat16)
        weight = weight.astype(jnp.bfloat16)
    op_elt = jnp.dtype(x2d.dtype).itemsize
    m_align = 16 if use_bf16 else 8

    def pick_tm(tm_cap):
        """Largest M tile <= tm_cap, >= 2 'parallel' grid steps when possible
        (keeps both v7x TensorCores busy), minimal M padding."""
        t = max(m_align, min(int(tm_cap), _round_up(m, m_align)))
        t = (t // m_align) * m_align
        grid_m = pl.cdiv(m, t)
        if grid_m < 2 and m >= 2 * m_align:
            grid_m = 2
        t = _round_up(pl.cdiv(m, grid_m), m_align)
        return t, grid_m

    # ------------------ fast path: weight resident in VMEM -------------------
    # Conservative estimate (weight / x-tile / out-tile all counted as
    # double-buffered) against a cross-generation-safe budget.
    w_bytes = 2 * in_dim * out_dim * op_elt
    row_bytes = 2 * (in_dim * op_elt + out_dim * out_elt)
    fixed_bytes = w_bytes + 2 * out_dim * 4
    if fixed_bytes + m_align * row_bytes <= resident_vmem_budget:
        tm_cap = min(tm, (resident_vmem_budget - fixed_bytes) // row_bytes)
        tm_r, grid_m = pick_tm(tm_cap)
        m_p = tm_r * grid_m

        x_p = x2d
        if m_p != m:   # only an M-remainder pad; K/N never need padding here
            x_p = jnp.zeros((m_p, in_dim), x2d.dtype).at[:m].set(x2d)

        cost = pl.CostEstimate(
            flops=2 * m_p * out_dim * in_dim,
            transcendentals=0,
            bytes_accessed=(m_p * in_dim * op_elt + in_dim * out_dim * op_elt
                            + out_dim * 4 + m_p * out_dim * out_elt))

        out2d = pl.pallas_call(
            _resident_kernel,
            out_shape=jax.ShapeDtypeStruct((m_p, out_dim), out_dtype),
            grid_spec=pltpu.PrefetchScalarGridSpec(
                num_scalar_prefetch=0,
                grid=(grid_m,),
                in_specs=[
                    pl.BlockSpec((tm_r, in_dim), lambda i: (i, 0)),      # x slab
                    pl.BlockSpec((in_dim, out_dim), lambda i: (0, 0)),   # resident w
                    pl.BlockSpec((1, out_dim), lambda i: (0, 0)),        # 1/||col||
                ],
                out_specs=pl.BlockSpec((tm_r, out_dim), lambda i: (i, 0)),
            ),
            compiler_params=pltpu.CompilerParams(
                dimension_semantics=("parallel",),
                vmem_limit_bytes=_VMEM_LIMIT),
            cost_estimate=cost,
        )(x_p, weight, inv_norm)

        return out2d[:m].reshape(*lead_shape, out_dim)

    # ------------------ fallback: tiled (M, N, K) grid -----------------------
    n_al = _round_up(out_dim, 128)
    k_al = _round_up(in_dim, 128)
    # Cover the whole (padded) N with one tile when affordable so x streams
    # from HBM exactly once; otherwise default to 512-wide N tiles.
    tn_t = (n_al if n_al <= 1024 else 512) if tn is None \
        else min(_round_up(tn, 128), n_al)
    tk_t = min(1024, k_al) if tk is None else min(_round_up(tk, 128), k_al)
    tm_t, grid_m = pick_tm(tm)

    # Shrink TK if double-buffered tiles would overrun the VMEM limit.
    def est_vmem(tm_, tn_, tk_):
        return (2 * tm_ * tk_ * op_elt + 2 * tk_ * tn_ * op_elt
                + 2 * tm_ * tn_ * out_elt + tm_ * tn_ * 4 + 2 * tn_ * 4)

    while est_vmem(tm_t, tn_t, tk_t) > (_VMEM_LIMIT - (8 << 20)) and tk_t > 256:
        tk_t = max(256, ((tk_t // 2) // 128) * 128)

    m_p = tm_t * grid_m
    n_p = _round_up(out_dim, tn_t)
    k_p = _round_up(in_dim, tk_t)

    # Zero-pad only when needed (padded rows/cols contribute exactly zero).
    x_p = x2d
    if (m_p, k_p) != (m, in_dim):
        x_p = jnp.zeros((m_p, k_p), x2d.dtype).at[:m, :in_dim].set(x2d)
    w_p = weight
    if (k_p, n_p) != (in_dim, out_dim):
        w_p = jnp.zeros((k_p, n_p), weight.dtype).at[:in_dim, :out_dim].set(weight)
    s_p = inv_norm
    if n_p != out_dim:
        s_p = jnp.zeros((1, n_p), inv_norm.dtype).at[:, :out_dim].set(inv_norm)

    grid = (grid_m, n_p // tn_t, k_p // tk_t)
    cost = pl.CostEstimate(
        flops=2 * m_p * n_p * k_p,
        transcendentals=0,
        bytes_accessed=(m_p * k_p * op_elt + k_p * n_p * op_elt
                        + n_p * 4 + m_p * n_p * out_elt))

    out_p = pl.pallas_call(
        _tiled_kernel,
        out_shape=jax.ShapeDtypeStruct((m_p, n_p), out_dtype),
        grid_spec=pltpu.PrefetchScalarGridSpec(
            num_scalar_prefetch=0,
            grid=grid,
            in_specs=[
                pl.BlockSpec((tm_t, tk_t), lambda i, j, k: (i, k)),   # x tile
                pl.BlockSpec((tk_t, tn_t), lambda i, j, k: (k, j)),   # w tile
                pl.BlockSpec((1, tn_t), lambda i, j, k: (0, j)),      # 1/||col||
            ],
            out_specs=pl.BlockSpec((tm_t, tn_t), lambda i, j, k: (i, j)),
            scratch_shapes=[pltpu.VMEM((tm_t, tn_t), jnp.float32)],
        ),
        compiler_params=pltpu.CompilerParams(
            dimension_semantics=("parallel", "parallel", "arbitrary"),
            vmem_limit_bytes=_VMEM_LIMIT),
        cost_estimate=cost,
    )(x_p, w_p, s_p)

    return out_p[:m, :out_dim].reshape(*lead_shape, out_dim)


# -----------------------------------------------------------------------------
# Init + reference
# -----------------------------------------------------------------------------
def init_norm_linear_weight(key, in_dim, out_dim):
    """xavier_uniform_ with gain = calculate_gain('relu') = sqrt(2)."""
    gain = math.sqrt(2.0)
    bound = gain * math.sqrt(6.0 / (in_dim + out_dim))
    return jax.random.uniform(key, (in_dim, out_dim), jnp.float32,
                              minval=-bound, maxval=bound)


def _reference(x, weight):
    w_n = weight / jnp.maximum(
        jnp.sqrt(jnp.sum(weight * weight, axis=0, keepdims=True)), 1e-12)
    return jnp.einsum("...d,dn->...n", x, w_n,
                      precision=jax.lax.Precision.HIGHEST)


if __name__ == "__main__":
    key = jax.random.PRNGKey(0)
    k_x, k_w, k_x2, k_w2 = jax.random.split(key, 4)

    # 1) Small shapes consistent with the module: batch=2, seq=8, in=32, out=64.
    #    Resident-weight fast path, 2-step "parallel" M grid.
    in_dim, out_dim = 32, 64
    x = jax.random.normal(k_x, (2, 8, in_dim), dtype=jnp.float32)
    w = init_norm_linear_weight(k_w, in_dim, out_dim)
    out = norm_linear(x, w)
    jax.block_until_ready(out)
    assert out.shape == (2, 8, out_dim)
    assert jnp.allclose(out, _reference(x, w), atol=1e-5, rtol=1e-5)

    # 2) Larger shape -> resident-weight fast path with multi-row-slab grid.
    in2, out2 = 640, 384
    x2 = jax.random.normal(k_x2, (512, in2), dtype=jnp.float32)
    w2 = init_norm_linear_weight(k_w2, in2, out2)
    ref2 = _reference(x2, w2)
    o2 = norm_linear(x2, w2)
    jax.block_until_ready(o2)
    assert o2.shape == (512, out2)
    assert jnp.allclose(o2, ref2, atol=1e-4, rtol=1e-5)

    # 3) Force the tiled (M, N, K) fallback on the same data: multi-step K
    #    accumulation, N tiling, K/N padding, pl.when init/finalize.
    o3 = norm_linear(x2, w2, resident_vmem_budget=0, tn=256, tk=256)
    jax.block_until_ready(o3)
    assert o3.shape == (512, out2)
    assert jnp.allclose(o3, ref2, atol=2e-4, rtol=1e-4)

    print("KERNEL_OK")
</pallas_src>

<mosaic_0001>
module attributes {stable_mosaic.version = 11 : i64} {
  func.func @_resident_kernel(%arg0: i32, %arg1: memref<8x32xf32, #tpu.memory_space<vmem>>, %arg2: memref<32x64xf32, #tpu.memory_space<vmem>>, %arg3: memref<1x64xf32, #tpu.memory_space<vmem>>, %arg4: memref<8x64xf32, #tpu.memory_space<vmem>>) attributes {dimension_semantics = [#tpu.dimension_semantics<parallel>], iteration_bounds = array<i64: 2>, scalar_prefetch = 0 : i64, scratch_operands = 0 : i64, tpu.core_type = #tpu.core_type<tc>, window_params = [{transform_indices = @transform_0, window_bounds = array<i64: 8, 32>}, {pipeline_mode = #tpu.pipeline_mode<synchronous>, transform_indices = @transform_1, window_bounds = array<i64: 32, 64>}, {pipeline_mode = #tpu.pipeline_mode<synchronous>, transform_indices = @transform_2, window_bounds = array<i64: 1, 64>}, {transform_indices = @transform_3, window_bounds = array<i64: 8, 64>}]} {
    %c0 = arith.constant 0 : index
    %c0_0 = arith.constant 0 : index
    %0 = vector.load %arg1[%c0, %c0_0] : memref<8x32xf32, #tpu.memory_space<vmem>>, vector<8x32xf32>
    %c0_1 = arith.constant 0 : index
    %c0_2 = arith.constant 0 : index
    %1 = vector.load %arg2[%c0_1, %c0_2] : memref<32x64xf32, #tpu.memory_space<vmem>>, vector<32x64xf32>
    %cst = arith.constant dense<0.000000e+00> : vector<8x64xf32>
    %2 = tpu.matmul %0, %1, %cst {dimension_numbers = #tpu.dot_dimension_numbers<[1], [0], [0], [1], [0, 0, 1, 1], [], []>} : vector<8x32xf32>, vector<32x64xf32>, vector<8x64xf32> -> vector<8x64xf32>
    %c0_3 = arith.constant 0 : index
    %c0_4 = arith.constant 0 : index
    %3 = vector.load %arg3[%c0_3, %c0_4] : memref<1x64xf32, #tpu.memory_space<vmem>>, vector<1x64xf32>
    %4 = vector.broadcast %3 : vector<1x64xf32> to vector<8x64xf32>
    %5 = arith.mulf %2, %4 : vector<8x64xf32>
    %c0_5 = arith.constant 0 : index
    %c0_6 = arith.constant 0 : index
    %6 = vector.load %arg4[%c0_5, %c0_6] : memref<8x64xf32, #tpu.memory_space<vmem>>, vector<8x64xf32>
    tpu.vector_store %arg4[%c0_5, %c0_6], %5 {strides = array<i32>} : memref<8x64xf32, #tpu.memory_space<vmem>>, vector<8x64xf32>,
    return
  }
  func.func @transform_0(%arg0: i32) -> (i32, i32) {
    %c0_i32 = arith.constant 0 : i32
    %c0_i32_0 = arith.constant 0 : i32
    return %arg0, %c0_i32 : i32, i32
  }
  func.func @transform_1(%arg0: i32) -> (i32, i32) {
    %c0_i32 = arith.constant 0 : i32
    %c0_i32_0 = arith.constant 0 : i32
    %c0_i32_1 = arith.constant 0 : i32
    return %c0_i32, %c0_i32_0 : i32, i32
  }
  func.func @transform_2(%arg0: i32) -> (i32, i32) {
    %c0_i32 = arith.constant 0 : i32
    %c0_i32_0 = arith.constant 0 : i32
    %c0_i32_1 = arith.constant 0 : i32
    return %c0_i32, %c0_i32_0 : i32, i32
  }
  func.func @transform_3(%arg0: i32) -> (i32, i32) {
    %c0_i32 = arith.constant 0 : i32
    %c0_i32_0 = arith.constant 0 : i32
    return %arg0, %c0_i32 : i32, i32
  }
}

</mosaic_0001>

<bundles_post_ra>
// kernel: tpu_custom_call.1
= control target key start
LH: loop header
LB: loop body
LE: loop exit
PB: predicated region body
PF: predicated region fallthrough
CT: control target
= control target key end

     0   :  { %8 = vsyncpa [#allocation3], 0  ;;  %s841_s0 = inlined_call_operand.hbm [shape: f32[16,32], index: 0, kind: input, shape index: {}]   ;;  %s842_s1 = inlined_call_operand.hbm [shape: f32[32,64], index: 1, kind: input, shape index: {}]   ;;  %s843_s2 = inlined_call_operand.vmem [shape: f32[1,64], index: 2, kind: input, shape index: {}]   ;;  %s844_s3 = inlined_call_operand.hbm [shape: f32[16,64], index: 3, kind: output, shape index: {}]  }
   0x1   :  { %10 = vsyncpa [#allocation3 + $0x1], 0 }
   0x2   :  { %11 = vsyncpa [#allocation6], 0 }
   0x3   :  { %12 = vsyncpa [#allocation4], 0 }
   0x4   :  { %14 = vsyncpa [#allocation4 + $0x1], 0  ;;  %s642_s12 = smov 0   ;;  %s644_s13 = smov 0  }
   0x5   :  { %s646_s14 = smov 0   ;;  %s648_s15 = smov 0  }
   0x6 LB: > { %s663_s16 = sadd.s32 4294967295, %s612_s15   ;;  %s384_s17 = sadd.s32 4294967294, %s612_s15   ;;  %s612_s15 = sphi %s648_s15, %s864_s15   ;;  %s608_s14 = sphi %s646_s14, %s863_s14   ;;  %s604_s13 = sphi %s644_s13, %s862_s13   ;;  %s600_s12 = sphi %s642_s12, %s861_s12  }
   0x7   : > { %p40_p0 = scmp.ne.s32.totalorder %s604_s13, %s600_s12  ;;  %p845_p1 = scmp.eq.s32.totalorder %s663_s16, 0 }
   0x8   : > { %p112_p3 = scmp.eq.s32.totalorder %s384_s17, 1  ;;  %p385_p5 = scmp.ge.s32.totalorder %s612_s15, 1 }
   0x9   : > { %p672_p4 = por %p845_p1, %p40_p0  ;;  %p119_p7 = scmp.lt.s32.totalorder %s612_s15, 3 }
   0xa   : > { %p677_p6 = por %p112_p3, %p40_p0  ;;  %s614_s21 = smov [#allocation5]  }
   0xb   : > { %s848_s18 = scalar_select %p672_p4, 1, 0 }
   0xc   : > { %s849_s19 = scalar_select %p677_p6, 1, 0 }
   0xd   : > { %p682_p8 = pnand %p385_p5, %p119_p7  ;;  %s131_s22 = sshll.u32 %s614_s21, 4  ;;  %s686_s22 = int_to_ptr.vmem [resolvable:$true] %s131_s22 }
   0xe   : > { %s698_s24 = sadd.s32 1, %s612_s15   ;;  %s27_s25 = sadd.s32 1, %s608_s14 }
   0xf   : > { %s850_s20 = scalar_select %p682_p8, 1, 0 }
  0x10   : > { %p430_p9 = pneg %p682_p8  ;;  %s24_s26 = ssub.s32 %s612_s15, %s698_s24 }
  0x11   : > { %s484_s29 = scalar_lea.hbm %s842_s1, 512 }
  0x12   : > { %p693_p11 = pnand %p430_p9, %p845_p1  ;;  %p485_p12 = scmp.ne.s32.totalorder %s842_s1, %s484_s29 }
  0x13   : > { %p491_p5 = scmp.lt.u32.totalorder %s484_s29, %s842_s1 }
  0x14   : > { %p486_p13 = pneg %p693_p11 }
  0x16   : > { %p487_p0 = pnand %p486_p13, %p485_p12 }
  0x18   : > { %p488_p3 = pneg %p487_p0 }
  0x1a   : > { %p493_p7 = pnand %p491_p5, %p488_p3 }
  0x1c   : > { %496 = shalt.err (!%p493_p7)
}
  0x1d   : > { %s497_s7 = scalar_lea.vmem %s686_s22, 512  ;;  %p505_p2 = scmp.lt.s32.totalorder %s686_s22, %s686_s22 }
  0x1e   : > { %p498_p9 = scmp.ne.s32.totalorder %s686_s22, %s497_s7  ;;  %p506_p6 = scmp.lt.s32.totalorder %s497_s7, %s497_s7 }
  0x20   : > { %p500_p10 = pnand %p498_p9, %p486_p13  ;;  %p507_p4 = por %p506_p6, %p505_p2 }
  0x22   : > { %p501_p1 = pneg %p500_p10 }
  0x24   : > { %p508_p8 = pnand %p507_p4, %p501_p1 }
  0x26   : > { %511 = shalt.err (!%p508_p8)
}
  0x27   : > { %s615_s8 = smov 128   ;;  %s616_s9 = smov 8  }
  0x28   : > { %433 = dma.hbm_to_vmem [thread:$0]  (!%p693_p11), %s842_s1, 512, %s686_s22, [#allocation6], %s615_s8, %s615_s8, %s616_s9  }
  0x29   : > { %p25_p2 = scmp.eq.s32.totalorder %s24_s26, 0  ;;  %p34_p1 = scmp.ne.s32.totalorder %s608_s14, %s604_s13 }
  0x2a   : > { %p35_p4 = scmp.eq.s32.totalorder %s612_s15, 0  ;;  %p443_p6 = scmp.lt.s32.totalorder %s612_s15, 2 }
  0x2b   : > { %s729_s17 = scalar_select %p25_p2, %s608_s14, %s27_s25  }
  0x2c   : > { %p36_p8 = por %p35_p4, %p34_p1  ;;  %p852_p10 = scmp.eq.s32.totalorder %s663_s16, 1 }
  0x2d   : > { %s148_s27 = sand.u32 1, %s608_s14   ;;  %s389_s28 = sshll.u32 %s612_s15, 7 }
  0x2e   : > { %p733_p12 = por %p852_p10, %p34_p1  ;;  %s388_s29 = sshll.u32 %s148_s27, 3 }
  0x2f   : > { %s742_s4 = scalar_lea.hbm %s841_s0, %s389_s28  ;;  %s152_s22 = scalar_lea.vmem [#allocation2], %s388_s29 }
  0x30   : > { %s159_s25 = sshll.u32 %s152_s22, 4  ;;  %p744_p11 = pnand %p443_p6, %p36_p8  ;;  %s748_s25 = int_to_ptr.vmem [resolvable:$true] %s159_s25 }
  0x31   : > { %s149_s5 = scalar_lea.sflag [#allocation3], %s148_s27  ;;  %s512_s6 = scalar_lea.hbm %s742_s4, 128 }
  0x32   : > { %p513_p13 = scmp.ne.s32.totalorder %s742_s4, %s512_s6  ;;  %p514_p0 = pneg %p744_p11 }
  0x33   : > { %s517_s9 = scalar_lea.hbm %s841_s0, 256  ;;  %p518_p7 = scmp.lt.u32.totalorder %s742_s4, %s841_s0 }
  0x34   : > { %p515_p3 = pnand %p514_p0, %p513_p13  ;;  %p519_p9 = scmp.lt.u32.totalorder %s517_s9, %s512_s6 }
  0x35   : > { %p521_p1 = scmp.lt.u32.totalorder %s512_s6, %s742_s4 }
  0x36   : > { %p516_p5 = pneg %p515_p3  ;;  %p520_p2 = por %p519_p9, %p518_p7 }
  0x38   : > { %p522_p4 = por %p521_p1, %p520_p2 }
  0x3a   : > { %p523_p6 = pnand %p522_p4, %p516_p5 }
  0x3c   : > { %526 = shalt.err (!%p523_p6)
}
  0x3d   : > { %s527_s27 = scalar_lea.vmem %s748_s25, 128  ;;  %s617_s28 = smov [#allocation2]  }
  0x3e   : > { %p528_p8 = scmp.ne.s32.totalorder %s748_s25, %s527_s27  ;;  %s532_s29 = sshll.u32 %s617_s28, 4  ;;  %s533_s29 = int_to_ptr.vmem [resolvable:$false] %s532_s29 }
  0x3f   : > { %s534_s23 = scalar_lea.vmem %s533_s29, 256  ;;  %p535_p3 = scmp.lt.s32.totalorder %s748_s25, %s533_s29 }
  0x40   : > { %p530_p10 = pnand %p528_p8, %p514_p0  ;;  %p536_p7 = scmp.lt.s32.totalorder %s534_s23, %s527_s27 }
  0x42   : > { %p531_p13 = pneg %p530_p10  ;;  %p537_p9 = por %p536_p7, %p535_p3 }
  0x44   : > { %p538_p2 = pnand %p537_p9, %p531_p13 }
  0x46   : > { %541 = shalt.err (!%p538_p2)
}
  0x47   : > { %437 = dma.hbm_to_vmem [thread:$0]  (!%p744_p11), %s742_s4, 128, %s748_s25, %s149_s5  }
  0x48   : > { %p855_p5 = scmp.ne.s32.totalorder %s850_s20, 0 }
  0x49   : > { %s778_s30 = sand.u32 (!%p855_p5), 1, %s604_s13   ;;  %p856_p0 = scmp.ne.s32.totalorder (!%p855_p5), %s848_s18, 0 }
  0x4a   : > { %168 = sbr.rel (%p855_p5) target bundleno = 323 (0x143), region = 32  ;;  %s391_s22 = sshll.u32 (!%p855_p5), %s778_s30, 3 }
  0x4b   : > { %s171_s6 = scalar_lea.sflag (!%p855_p5), [#allocation3], %s778_s30  ;;  %s174_s7 = scalar_lea.vmem (!%p855_p5), [#allocation2], %s391_s22 }
  0x51   : > { %587 = dma.done.wait (%p856_p0), %s171_s6, 128  }
  0x52   : > { %589 = vsyncadd (%p856_p0), %s171_s6, 4294967168  ;;  %p857_p1 = scmp.eq.s32.totalorder %s663_s16, 0 }
  0x54   : > { %591 = dma.done.wait (%p857_p1), [#allocation6], 512   ;;  %p858_p11 = pmov %p857_p1 }
  0x55   : > { %v618_v0 = vmov 0.0|0.0   ;;  %vm619_vm0 = vmmov 0   ;;  %v620_v1 = vmov 0.0   ;;  %v202_v2 = vld [vmem:[#allocation5] sm:$0xff]  ;;  %v203_v3 = vld [vmem:[#allocation5 + $0x8] sm:$0xff]  ;;  %v204_v4 = vld [vmem:[#allocation5 + $0x10] sm:$0xff] }
  0x56   : > { %593 = vsyncadd (%p858_p11), [#allocation6], 4294966784  ;;  %416 = vmatprep.subr.bf16.mxu0 %v618_v0  ;;  %413 = vmatprep.mubr.msk.f32.mxu0 %vm619_vm0, %v620_v1  ;;  %v417_v5 = vpack.c.bf16 %v203_v3, %v202_v2  ;;  %v205_v6 = vld [vmem:[#allocation5 + $0x18] sm:$0xff]  ;;  %vm206_vm1 = vcmask 261120   ;;  %v395_v9 = vld [vmem:[%s843_s2] ss:$0 sm:$0xff] }
  0x57   : > { %v420_v7 = vpack.c.bf16 %v205_v6, %v204_v4  ;;  %v201_v8 = vld [vmem:[%s174_s7] sm:$0xff]  ;;  %s397_s4 = sshll.u32 %s663_s16, 7  ;;  %s200_s25 = scalar_lea.vmem [#allocation7], %s391_s22  ;;  %vm288_vm2 = vcmask 523264  }
  0x58   : > { %418 = vmatpush3.bf16.msra.mxu0 %v417_v5  ;;  %s304_s26 = sshll.u32 %s200_s25, 4  ;;  %s797_s9 = scalar_lea.hbm %s844_s3, %s397_s4  ;;  %s799_s26 = int_to_ptr.vmem [resolvable:$true] %s304_s26 }
  0x59   : > { %419 = vmatprep.subr.bf16.mxu0 %v618_v0  ;;  %s291_s10 = scalar_lea.sflag [#allocation4], %s778_s30  ;;  %s542_s11 = scalar_lea.vmem %s799_s26, 128 }
  0x5a   : > { %p543_p4 = scmp.ne.s32.totalorder %s799_s26, %s542_s11  ;;  %s621_s16 = smov [#allocation7]  }
  0x5b   : > { %s546_s27 = sshll.u32 %s621_s16, 4  ;;  %s547_s27 = int_to_ptr.vmem [resolvable:$false] %s546_s27 }
  0x5c   : > { %421 = vmatpush3.bf16.msra.mxu0 %v420_v7  ;;  %p544_p6 = pnand %p543_p4, %p733_p12  ;;  %s548_s28 = scalar_lea.vmem %s547_s27, 256 }
  0x5d   : > { %p549_p10 = scmp.lt.s32.totalorder %s799_s26, %s547_s27  ;;  %p550_p13 = scmp.lt.s32.totalorder %s548_s28, %s542_s11 }
  0x5e   : > { %p545_p8 = pneg %p544_p6 }
  0x5f   : > { %414 = vmatmul.mubr.msk.f32.vlgmr.msra.gmra.mrb[0].mxu0 %vm206_vm1, %v201_v8  ;;  %p551_p3 = por %p550_p13, %p549_p10 }
  0x61   : > { %p552_p7 = pnand %p551_p3, %p545_p8 }
 0x132   : > { %v276_v10 = vpop.f32.mrb[0].mxu0 }
 0x133   : > { %v287_v11 = vmul.f32 %v395_v9, %v276_v10  ;;  %v415_v12 = vpop.f32.mrb[1].mxu0 }
 0x135   : > { %289 = vst.msk [vmem:[%s200_s25] sm:$0xff] %vm288_vm2, %v287_v11 }
 0x136   : > { %555 = shalt.err (!%p552_p7)
}
 0x137   : > { %s556_s29 = scalar_lea.hbm %s797_s9, 128  ;;  %s560_s22 = scalar_lea.hbm %s844_s3, 256 }
 0x138   : > { %p557_p9 = scmp.ne.s32.totalorder %s797_s9, %s556_s29  ;;  %p561_p0 = scmp.lt.u32.totalorder %s797_s9, %s844_s3 }
 0x139   : > { %p562_p1 = scmp.lt.u32.totalorder %s560_s22, %s556_s29  ;;  %p564_p4 = scmp.lt.u32.totalorder %s556_s29, %s797_s9 }
 0x13a   : > { %p558_p2 = pnand %p557_p9, %p733_p12 }
 0x13b   : > { %p563_p11 = por %p562_p1, %p561_p0 }
 0x13c   : > { %p559_p5 = pneg %p558_p2 }
 0x13d   : > { %p565_p6 = por %p564_p4, %p563_p11 }
 0x13f   : > { %p566_p8 = pnand %p565_p6, %p559_p5 }
 0x141   : > { %569 = shalt.err (!%p566_p8)
}
 0x142   : > { %428 = dma.vmem_to_hbm [thread:$0]  (%p733_p12), %s799_s26, 128, %s797_s9, %s291_s10  }
 0x143 PF: > { %s316_s18 = sand.u32 1, %s600_s12   ;;  %p859_p10 = scmp.ne.s32.totalorder %s849_s19, 0 }
 0x144   : > { %p860_p13 = scmp.ge.s32.totalorder %s612_s15, 2  ;;  %s317_s20 = scalar_lea.sflag [#allocation4], %s316_s18 }
 0x146   : > { %p439_p3 = pnand %p860_p13, %p859_p10 }
 0x148   : > { %595 = dma.done.wait (!%p439_p3), %s317_s20, 128  }
 0x149   : > { %597 = vsyncadd (!%p439_p3), %s317_s20, 4294967168  ;;  %p17_p7 = scmp.ge.s32.totalorder %s698_s24, 4   ;;  %s861_s12 = smov %s604_s13 }
 0x14a   : > { %s862_s13 = smov %s608_s14  ;;  %s863_s14 = smov %s729_s17 }
 0x14b   : > { %s864_s15 = smov %s698_s24  ;;  %19 = sbr.rel (!%p17_p7) target bundleno = 6 (0x6), region = 81 }
 0x152   :  { %322 = vsyncpa [#allocation3], 1 }
 0x153   :  { %324 = vsyncpa [#allocation3 + $0x1], 1 }
 0x154   :  { %325 = vsyncpa [#allocation6], 1 }
 0x155   :  { %326 = vsyncpa [#allocation4], 1 }
 0x156   :  { %328 = vsyncpa [#allocation4 + $0x1], 1 }

</bundles_post_ra>
